<compile_context>
chip_gen: v6e
topology: v6e:2x2x1
jax: 0.10.0
libtpu: 0.0.40
codegen_flags: <defaults>
</compile_context>

<pallas_src>
import jax
import jax.numpy as jnp
from jax.experimental import pallas as pl
from jax.experimental.pallas import tpu as pltpu

EPS = 1e-5

IN_F = 28 * 28   # 784 (kept unpadded as the layer-1 contraction dim)
HID = 100
HID_P = 128
OUT = 10
OUT_P = 128


def mlp_bn_kernel(
    x_ref,                       # (B, IN_F)      f32  (cast to bf16 in-kernel)
    w1_ref, g1_ref, be1_ref,     # (IN_F, HID_P)  bf16 ; (1, HID_P) f32 x2
    w2_ref, g2_ref, be2_ref,     # (HID_P, HID_P) bf16 ; (1, HID_P) f32 x2
    w3_ref, g3_ref, be3_ref,     # (HID_P, HID_P) bf16 ; (1, HID_P) f32 x2
    w4_ref, b4_ref,              # (HID_P, OUT_P) bf16 ; (1, OUT_P) f32
    o_ref,                       # (B, OUT_P)     f32
):
    def matmul(h_bf16, w_ref):
        # bf16 x bf16 MXU matmul with f32 accumulation.
        return jnp.dot(h_bf16, w_ref[...], preferred_element_type=jnp.float32)

    def bn_relu(z, g_ref, be_ref):
        # Training-mode BatchNorm1d (biased variance), two-pass stats in f32:
        # mean first, then variance of the centered values, then a fused
        # relu(d * scale + beta).  rsqrt goes to the EUP (free bundle slot).
        mean = jnp.mean(z, axis=0, keepdims=True)
        d = z - mean
        var = jnp.mean(d * d, axis=0, keepdims=True)
        scale = g_ref[...] * jax.lax.rsqrt(var + EPS)
        return jnp.maximum(d * scale + be_ref[...], 0.0)

    # Pre-BN biases are omitted on purpose: training-mode BN subtracts the
    # batch mean, which contains any constant per-feature bias, so they cancel
    # exactly.  (Eval-mode BN with running stats would need them re-added.)
    x_bf16 = x_ref[...].astype(jnp.bfloat16)           # cheap VPU cast in VMEM
    h = bn_relu(matmul(x_bf16, w1_ref), g1_ref, be1_ref)
    h = bn_relu(matmul(h.astype(jnp.bfloat16), w2_ref), g2_ref, be2_ref)
    h = bn_relu(matmul(h.astype(jnp.bfloat16), w3_ref), g3_ref, be3_ref)
    o_ref[...] = matmul(h.astype(jnp.bfloat16), w4_ref) + b4_ref[...]


def _pad_to(a, shape):
    pads = tuple((0, t - s) for s, t in zip(a.shape, shape))
    return jnp.pad(a, pads)


def prepare_params(params):
    """One-time parameter prep (pad to lane-dense 128-wide shapes, cast weights
    to bf16).  Hoisted out of the per-call forward so no pad/convert XLA ops
    run on the hot path.  Padded rows/cols are zero, so padded features stay
    exactly zero through BN/ReLU and contribute nothing."""
    prep = {
        "w1": _pad_to(params["w1"], (IN_F, HID_P)).astype(jnp.bfloat16),
        "w2": _pad_to(params["w2"], (HID_P, HID_P)).astype(jnp.bfloat16),
        "w3": _pad_to(params["w3"], (HID_P, HID_P)).astype(jnp.bfloat16),
        "w4": _pad_to(params["w4"], (HID_P, OUT_P)).astype(jnp.bfloat16),
        "b4": _pad_to(params["b4"], (1, OUT_P)).astype(jnp.float32),
    }
    for i in (1, 2, 3):
        prep[f"g{i}"] = _pad_to(params[f"g{i}"], (1, HID_P)).astype(jnp.float32)
        prep[f"be{i}"] = _pad_to(params[f"be{i}"], (1, HID_P)).astype(jnp.float32)
    return jax.tree_util.tree_map(jax.device_put, prep)


def _vmem_limit_bytes(args, B):
    # Inputs + output + a few live (B, 128) f32 activations, with 2x slack,
    # capped at the actual chip budget minus headroom (v7x has only 64 MiB).
    bytes_needed = sum(a.size * a.dtype.itemsize for a in args)
    bytes_needed += B * OUT_P * 4 + 4 * B * HID_P * 4
    try:
        cap = int(pltpu.get_tpu_info().vmem_capacity_bytes)
    except Exception:
        cap = 64 * 1024 * 1024
    return int(min(max(32 * 1024 * 1024, 2 * bytes_needed), cap - 8 * 1024 * 1024))


@jax.jit
def mlp_batchnorm_forward(x_nchw, prep):
    """x_nchw: (B, 1, 28, 28) float32, prep: output of prepare_params.
    Returns (B, OUT_P) float32 padded logits (training-mode BatchNorm
    semantics); real logits are [:, :OUT], sliced by the consumer."""
    B = x_nchw.shape[0]
    x = x_nchw.reshape(B, IN_F)          # view reshape; stays f32, K = 784

    args = (
        x,
        prep["w1"], prep["g1"], prep["be1"],
        prep["w2"], prep["g2"], prep["be2"],
        prep["w3"], prep["g3"], prep["be3"],
        prep["w4"], prep["b4"],
    )

    vmem_spec = pl.BlockSpec(memory_space=pltpu.MemorySpace.VMEM)
    return pl.pallas_call(
        mlp_bn_kernel,
        out_shape=jax.ShapeDtypeStruct((B, OUT_P), jnp.float32),
        in_specs=[vmem_spec] * len(args),
        out_specs=vmem_spec,
        compiler_params=pltpu.CompilerParams(
            vmem_limit_bytes=_vmem_limit_bytes(args, B)),
    )(*args)


def init_params(key):
    """PyTorch-like init: Linear U[-1/sqrt(fan_in), +1/sqrt(fan_in)], BN gamma=1, beta=0."""
    dims = [(IN_F, HID), (HID, HID), (HID, HID), (HID, OUT)]
    params = {}
    keys = jax.random.split(key, 2 * len(dims))
    for i, (fan_in, fan_out) in enumerate(dims):
        bound = 1.0 / (fan_in ** 0.5)
        params[f"w{i+1}"] = jax.random.uniform(
            keys[2 * i], (fan_in, fan_out), jnp.float32, -bound, bound)
        params[f"b{i+1}"] = jax.random.uniform(
            keys[2 * i + 1], (1, fan_out), jnp.float32, -bound, bound)
    for i in (1, 2, 3):
        params[f"g{i}"] = jnp.ones((1, HID), jnp.float32)
        params[f"be{i}"] = jnp.zeros((1, HID), jnp.float32)
    return params


def reference_forward(x_nchw, params):
    """Pure-JAX full-precision reference (includes b1..b3, two-pass BN)."""
    B = x_nchw.shape[0]
    h = x_nchw.reshape(B, -1).astype(jnp.float32)

    def bn_relu(z, g, b):
        mean = jnp.mean(z, axis=0, keepdims=True)
        var = jnp.mean((z - mean) ** 2, axis=0, keepdims=True)
        return jnp.maximum((z - mean) / jnp.sqrt(var + EPS) * g + b, 0.0)

    h = bn_relu(h @ params["w1"] + params["b1"], params["g1"], params["be1"])
    h = bn_relu(h @ params["w2"] + params["b2"], params["g2"], params["be2"])
    h = bn_relu(h @ params["w3"] + params["b3"], params["g3"], params["be3"])
    return h @ params["w4"] + params["b4"]


def matched_reference_forward(x_nchw, params):
    """Pure-JAX reference with the same numerics as the kernel (bf16 matmuls,
    f32 accumulation, biases b1..b3 dropped, two-pass BN in f32)."""
    B = x_nchw.shape[0]
    h = x_nchw.reshape(B, -1).astype(jnp.float32)

    def dot(a, w):
        return jnp.dot(a.astype(jnp.bfloat16), w.astype(jnp.bfloat16),
                       preferred_element_type=jnp.float32)

    def bn_relu(z, g, b):
        mean = jnp.mean(z, axis=0, keepdims=True)
        d = z - mean
        var = jnp.mean(d * d, axis=0, keepdims=True)
        return jnp.maximum(d * (g * jax.lax.rsqrt(var + EPS)) + b, 0.0)

    h = bn_relu(dot(h, params["w1"]), params["g1"], params["be1"])
    h = bn_relu(dot(h, params["w2"]), params["g2"], params["be2"])
    h = bn_relu(dot(h, params["w3"]), params["g3"], params["be3"])
    return dot(h, params["w4"]) + params["b4"]


if __name__ == "__main__":
    key = jax.random.PRNGKey(0)
    k_param, k_x = jax.random.split(key)
    params = init_params(k_param)
    prep = prepare_params(params)          # one-time pad/cast, off the hot path

    # Small MNIST-like batch: (B, 1, 28, 28) NCHW, as the PyTorch module expects.
    x = jax.random.normal(k_x, (8, 1, 28, 28), jnp.float32)

    out_padded = mlp_batchnorm_forward(x, prep)
    out_padded = jax.block_until_ready(out_padded)
    assert out_padded.shape == (8, OUT_P)

    out = out_padded[:, :OUT]              # slice once at the consumer
    assert out.shape == (8, 10)

    ref_matched = matched_reference_forward(x, params)
    ref_f32 = reference_forward(x, params)

    # Tight check vs the numerics-matched reference (validates padding /
    # bias-cancellation / two-pass-BN plumbing).
    assert jnp.allclose(out, ref_matched, atol=2e-2, rtol=2e-2), "mismatch vs matched JAX reference"
    # Loose check vs the exact f32 reference (bf16 matmul noise only).
    assert jnp.allclose(out, ref_f32, atol=1e-1, rtol=1e-1), "mismatch vs f32 JAX reference"

    print("KERNEL_OK")
</pallas_src>

<mosaic_0001>
module attributes {stable_mosaic.version = 11 : i64} {
  func.func @mlp_bn_kernel(%arg0: memref<8x784xf32, #tpu.memory_space<vmem>>, %arg1: memref<784x128xbf16, #tpu.memory_space<vmem>>, %arg2: memref<1x128xf32, #tpu.memory_space<vmem>>, %arg3: memref<1x128xf32, #tpu.memory_space<vmem>>, %arg4: memref<128x128xbf16, #tpu.memory_space<vmem>>, %arg5: memref<1x128xf32, #tpu.memory_space<vmem>>, %arg6: memref<1x128xf32, #tpu.memory_space<vmem>>, %arg7: memref<128x128xbf16, #tpu.memory_space<vmem>>, %arg8: memref<1x128xf32, #tpu.memory_space<vmem>>, %arg9: memref<1x128xf32, #tpu.memory_space<vmem>>, %arg10: memref<128x128xbf16, #tpu.memory_space<vmem>>, %arg11: memref<1x128xf32, #tpu.memory_space<vmem>>, %arg12: memref<8x128xf32, #tpu.memory_space<vmem>>) attributes {dimension_semantics = [], scalar_prefetch = 0 : i64, scratch_operands = 0 : i64, tpu.core_type = #tpu.core_type<tc>} {
    %c0 = arith.constant 0 : index
    %c0_0 = arith.constant 0 : index
    %0 = vector.load %arg0[%c0, %c0_0] : memref<8x784xf32, #tpu.memory_space<vmem>>, vector<8x784xf32>
    %1 = arith.truncf %0 : vector<8x784xf32> to vector<8x784xbf16>
    %c0_1 = arith.constant 0 : index
    %c0_2 = arith.constant 0 : index
    %2 = vector.load %arg1[%c0_1, %c0_2] : memref<784x128xbf16, #tpu.memory_space<vmem>>, vector<784x128xbf16>
    %cst = arith.constant dense<0.000000e+00> : vector<8x128xf32>
    %3 = tpu.matmul %1, %2, %cst {dimension_numbers = #tpu.dot_dimension_numbers<[1], [0], [0], [1], [0, 0, 1, 1], [], []>} : vector<8x784xbf16>, vector<784x128xbf16>, vector<8x128xf32> -> vector<8x128xf32>
    %cst_3 = arith.constant dense<0.000000e+00> : vector<128xf32>
    %4 = vector.multi_reduction <add>, %3, %cst_3 [0] : vector<8x128xf32> to vector<128xf32>
    %5 = vector.shape_cast %4 : vector<128xf32> to vector<1x128xf32>
    %cst_4 = arith.constant 8.000000e+00 : f32
    %6 = vector.broadcast %cst_4 : f32 to vector<1x128xf32>
    %7 = arith.divf %5, %6 : vector<1x128xf32>
    %8 = vector.broadcast %7 : vector<1x128xf32> to vector<8x128xf32>
    %9 = arith.subf %3, %8 : vector<8x128xf32>
    %10 = arith.mulf %9, %9 : vector<8x128xf32>
    %cst_5 = arith.constant dense<0.000000e+00> : vector<128xf32>
    %11 = vector.multi_reduction <add>, %10, %cst_5 [0] : vector<8x128xf32> to vector<128xf32>
    %12 = vector.shape_cast %11 : vector<128xf32> to vector<1x128xf32>
    %cst_6 = arith.constant 8.000000e+00 : f32
    %13 = vector.broadcast %cst_6 : f32 to vector<1x128xf32>
    %14 = arith.divf %12, %13 : vector<1x128xf32>
    %c0_7 = arith.constant 0 : index
    %c0_8 = arith.constant 0 : index
    %15 = vector.load %arg2[%c0_7, %c0_8] : memref<1x128xf32, #tpu.memory_space<vmem>>, vector<1x128xf32>
    %cst_9 = arith.constant 9.99999974E-6 : f32
    %16 = vector.broadcast %cst_9 : f32 to vector<1x128xf32>
    %17 = arith.addf %14, %16 : vector<1x128xf32>
    %18 = math.rsqrt %17 : vector<1x128xf32>
    %19 = arith.mulf %15, %18 : vector<1x128xf32>
    %20 = vector.broadcast %19 : vector<1x128xf32> to vector<8x128xf32>
    %21 = arith.mulf %9, %20 : vector<8x128xf32>
    %c0_10 = arith.constant 0 : index
    %c0_11 = arith.constant 0 : index
    %22 = vector.load %arg3[%c0_10, %c0_11] : memref<1x128xf32, #tpu.memory_space<vmem>>, vector<1x128xf32>
    %23 = vector.broadcast %22 : vector<1x128xf32> to vector<8x128xf32>
    %24 = arith.addf %21, %23 : vector<8x128xf32>
    %cst_12 = arith.constant 0.000000e+00 : f32
    %25 = vector.broadcast %cst_12 : f32 to vector<8x128xf32>
    %26 = arith.maximumf %24, %25 : vector<8x128xf32>
    %27 = arith.truncf %26 : vector<8x128xf32> to vector<8x128xbf16>
    %c0_13 = arith.constant 0 : index
    %c0_14 = arith.constant 0 : index
    %28 = vector.load %arg4[%c0_13, %c0_14] : memref<128x128xbf16, #tpu.memory_space<vmem>>, vector<128x128xbf16>
    %cst_15 = arith.constant dense<0.000000e+00> : vector<8x128xf32>
    %29 = tpu.matmul %27, %28, %cst_15 {dimension_numbers = #tpu.dot_dimension_numbers<[1], [0], [0], [1], [0, 0, 1, 1], [], []>} : vector<8x128xbf16>, vector<128x128xbf16>, vector<8x128xf32> -> vector<8x128xf32>
    %cst_16 = arith.constant dense<0.000000e+00> : vector<128xf32>
    %30 = vector.multi_reduction <add>, %29, %cst_16 [0] : vector<8x128xf32> to vector<128xf32>
    %31 = vector.shape_cast %30 : vector<128xf32> to vector<1x128xf32>
    %cst_17 = arith.constant 8.000000e+00 : f32
    %32 = vector.broadcast %cst_17 : f32 to vector<1x128xf32>
    %33 = arith.divf %31, %32 : vector<1x128xf32>
    %34 = vector.broadcast %33 : vector<1x128xf32> to vector<8x128xf32>
    %35 = arith.subf %29, %34 : vector<8x128xf32>
    %36 = arith.mulf %35, %35 : vector<8x128xf32>
    %cst_18 = arith.constant dense<0.000000e+00> : vector<128xf32>
    %37 = vector.multi_reduction <add>, %36, %cst_18 [0] : vector<8x128xf32> to vector<128xf32>
    %38 = vector.shape_cast %37 : vector<128xf32> to vector<1x128xf32>
    %cst_19 = arith.constant 8.000000e+00 : f32
    %39 = vector.broadcast %cst_19 : f32 to vector<1x128xf32>
    %40 = arith.divf %38, %39 : vector<1x128xf32>
    %c0_20 = arith.constant 0 : index
    %c0_21 = arith.constant 0 : index
    %41 = vector.load %arg5[%c0_20, %c0_21] : memref<1x128xf32, #tpu.memory_space<vmem>>, vector<1x128xf32>
    %cst_22 = arith.constant 9.99999974E-6 : f32
    %42 = vector.broadcast %cst_22 : f32 to vector<1x128xf32>
    %43 = arith.addf %40, %42 : vector<1x128xf32>
    %44 = math.rsqrt %43 : vector<1x128xf32>
    %45 = arith.mulf %41, %44 : vector<1x128xf32>
    %46 = vector.broadcast %45 : vector<1x128xf32> to vector<8x128xf32>
    %47 = arith.mulf %35, %46 : vector<8x128xf32>
    %c0_23 = arith.constant 0 : index
    %c0_24 = arith.constant 0 : index
    %48 = vector.load %arg6[%c0_23, %c0_24] : memref<1x128xf32, #tpu.memory_space<vmem>>, vector<1x128xf32>
    %49 = vector.broadcast %48 : vector<1x128xf32> to vector<8x128xf32>
    %50 = arith.addf %47, %49 : vector<8x128xf32>
    %cst_25 = arith.constant 0.000000e+00 : f32
    %51 = vector.broadcast %cst_25 : f32 to vector<8x128xf32>
    %52 = arith.maximumf %50, %51 : vector<8x128xf32>
    %53 = arith.truncf %52 : vector<8x128xf32> to vector<8x128xbf16>
    %c0_26 = arith.constant 0 : index
    %c0_27 = arith.constant 0 : index
    %54 = vector.load %arg7[%c0_26, %c0_27] : memref<128x128xbf16, #tpu.memory_space<vmem>>, vector<128x128xbf16>
    %cst_28 = arith.constant dense<0.000000e+00> : vector<8x128xf32>
    %55 = tpu.matmul %53, %54, %cst_28 {dimension_numbers = #tpu.dot_dimension_numbers<[1], [0], [0], [1], [0, 0, 1, 1], [], []>} : vector<8x128xbf16>, vector<128x128xbf16>, vector<8x128xf32> -> vector<8x128xf32>
    %cst_29 = arith.constant dense<0.000000e+00> : vector<128xf32>
    %56 = vector.multi_reduction <add>, %55, %cst_29 [0] : vector<8x128xf32> to vector<128xf32>
    %57 = vector.shape_cast %56 : vector<128xf32> to vector<1x128xf32>
    %cst_30 = arith.constant 8.000000e+00 : f32
    %58 = vector.broadcast %cst_30 : f32 to vector<1x128xf32>
    %59 = arith.divf %57, %58 : vector<1x128xf32>
    %60 = vector.broadcast %59 : vector<1x128xf32> to vector<8x128xf32>
    %61 = arith.subf %55, %60 : vector<8x128xf32>
    %62 = arith.mulf %61, %61 : vector<8x128xf32>
    %cst_31 = arith.constant dense<0.000000e+00> : vector<128xf32>
    %63 = vector.multi_reduction <add>, %62, %cst_31 [0] : vector<8x128xf32> to vector<128xf32>
    %64 = vector.shape_cast %63 : vector<128xf32> to vector<1x128xf32>
    %cst_32 = arith.constant 8.000000e+00 : f32
    %65 = vector.broadcast %cst_32 : f32 to vector<1x128xf32>
    %66 = arith.divf %64, %65 : vector<1x128xf32>
    %c0_33 = arith.constant 0 : index
    %c0_34 = arith.constant 0 : index
    %67 = vector.load %arg8[%c0_33, %c0_34] : memref<1x128xf32, #tpu.memory_space<vmem>>, vector<1x128xf32>
    %cst_35 = arith.constant 9.99999974E-6 : f32
    %68 = vector.broadcast %cst_35 : f32 to vector<1x128xf32>
    %69 = arith.addf %66, %68 : vector<1x128xf32>
    %70 = math.rsqrt %69 : vector<1x128xf32>
    %71 = arith.mulf %67, %70 : vector<1x128xf32>
    %72 = vector.broadcast %71 : vector<1x128xf32> to vector<8x128xf32>
    %73 = arith.mulf %61, %72 : vector<8x128xf32>
    %c0_36 = arith.constant 0 : index
    %c0_37 = arith.constant 0 : index
    %74 = vector.load %arg9[%c0_36, %c0_37] : memref<1x128xf32, #tpu.memory_space<vmem>>, vector<1x128xf32>
    %75 = vector.broadcast %74 : vector<1x128xf32> to vector<8x128xf32>
    %76 = arith.addf %73, %75 : vector<8x128xf32>
    %cst_38 = arith.constant 0.000000e+00 : f32
    %77 = vector.broadcast %cst_38 : f32 to vector<8x128xf32>
    %78 = arith.maximumf %76, %77 : vector<8x128xf32>
    %79 = arith.truncf %78 : vector<8x128xf32> to vector<8x128xbf16>
    %c0_39 = arith.constant 0 : index
    %c0_40 = arith.constant 0 : index
    %80 = vector.load %arg10[%c0_39, %c0_40] : memref<128x128xbf16, #tpu.memory_space<vmem>>, vector<128x128xbf16>
    %cst_41 = arith.constant dense<0.000000e+00> : vector<8x128xf32>
    %81 = tpu.matmul %79, %80, %cst_41 {dimension_numbers = #tpu.dot_dimension_numbers<[1], [0], [0], [1], [0, 0, 1, 1], [], []>} : vector<8x128xbf16>, vector<128x128xbf16>, vector<8x128xf32> -> vector<8x128xf32>
    %c0_42 = arith.constant 0 : index
    %c0_43 = arith.constant 0 : index
    %82 = vector.load %arg11[%c0_42, %c0_43] : memref<1x128xf32, #tpu.memory_space<vmem>>, vector<1x128xf32>
    %83 = vector.broadcast %82 : vector<1x128xf32> to vector<8x128xf32>
    %84 = arith.addf %81, %83 : vector<8x128xf32>
    %c0_44 = arith.constant 0 : index
    %c0_45 = arith.constant 0 : index
    %85 = vector.load %arg12[%c0_44, %c0_45] : memref<8x128xf32, #tpu.memory_space<vmem>>, vector<8x128xf32>
    tpu.vector_store %arg12[%c0_44, %c0_45], %84 {strides = array<i32>} : memref<8x128xf32, #tpu.memory_space<vmem>>, vector<8x128xf32>,
    return
  }
}

</mosaic_0001>

<bundles_post_ra>
// kernel: mlp_batchnorm_forward.1
= control target key start
LH: loop header
LB: loop body
LE: loop exit
PB: predicated region body
PF: predicated region fallthrough
CT: control target
= control target key end

     0   :  { %v1402_v41 = vmov 0.0   ;;  %vm1403_vm0 = vmmov 0   ;;  %vm449_vm1 = vcmask 130048   ;;  %s1772_s0 = inlined_call_operand.vmem [shape: f32[8,784], index: 0, kind: input, shape index: {}]   ;;  %s1773_s1 = inlined_call_operand.vmem [shape: bf16[784,128], index: 1, kind: input, shape index: {}]   ;;  %s1774_s2 = inlined_call_operand.vmem [shape: f32[1,128], index: 2, kind: input, shape index: {}]   ;;  %s1775_s3 = inlined_call_operand.vmem [shape: f32[1,128], index: 3, kind: input, shape index: {}]   ;;  %s1776_s4 = inlined_call_operand.vmem [shape: bf16[128,128], index: 4, kind: input, shape index: {}]   ;;  %s1777_s5 = inlined_call_operand.vmem [shape: f32[1,128], index: 5, kind: input, shape index: {}]   ;;  %s1778_s6 = inlined_call_operand.vmem [shape: f32[1,128], index: 6, kind: input, shape index: {}]   ;;  %s1779_s7 = inlined_call_operand.vmem [shape: bf16[128,128], index: 7, kind: input, shape index: {}]   ;;  %s1780_s8 = inlined_call_operand.vmem [shape: f32[1,128], index: 8, kind: input, shape index: {}]   ;;  %s1781_s9 = inlined_call_operand.vmem [shape: f32[1,128], index: 9, kind: input, shape index: {}]   ;;  %s1782_s10 = inlined_call_operand.vmem [shape: bf16[128,128], index: 10, kind: input, shape index: {}]   ;;  %s1783_s11 = inlined_call_operand.vmem [shape: f32[1,128], index: 11, kind: input, shape index: {}]   ;;  %s1784_s12 = inlined_call_operand.hbm [shape: f32[8,128], index: 12, kind: output, shape index: {}]  }
   0x1   :  { %v1301_v0 = vld [vmem:[%s1773_s1 + $0x78] sm:$0xff]   ;;  %v1305_v4 = vld [vmem:[%s1773_s1 + $0x70] sm:$0xff]   ;;  %v1309_v8 = vld [vmem:[%s1773_s1 + $0x68] sm:$0xff]  }
   0x2   :  { %v1302_v1 = vld [vmem:[%s1773_s1 + $0xf8] sm:$0xff]   ;;  %1137 = vmatprep.subr.bf16.mxu0 %v1301_v0  ;;  %v1306_v5 = vld [vmem:[%s1773_s1 + $0xf0] sm:$0xff]   ;;  %v1310_v9 = vld [vmem:[%s1773_s1 + $0xe8] sm:$0xff]  }
   0x3   :  { %v1303_v2 = vld [vmem:[%s1773_s1 + $0x38] sm:$0xff]   ;;  %1159 = vmatprep.subr.bf16.mxu1 %v1302_v1  ;;  %v1307_v6 = vld [vmem:[%s1773_s1 + $0x30] sm:$0xff]   ;;  %v1311_v10 = vld [vmem:[%s1773_s1 + $0x28] sm:$0xff]  }
   0x4   :  { %v1304_v3 = vld [vmem:[%s1773_s1 + $0xb8] sm:$0xff]   ;;  %1138 = vmatpush3.bf16.msra.mxu0 %v1303_v2  ;;  %v1308_v7 = vld [vmem:[%s1773_s1 + $0xb0] sm:$0xff]   ;;  %v1312_v11 = vld [vmem:[%s1773_s1 + $0xa8] sm:$0xff]  }
   0x5   :  { %1160 = vmatpush3.bf16.msra.mxu1 %v1304_v3  ;;  %1139 = vmatprep.subr.bf16.mxu0 %v1305_v4  ;;  %v1313_v12 = vld [vmem:[%s1773_s1 + $0x60] sm:$0xff]   ;;  %v1317_v16 = vld [vmem:[%s1773_s1 + $0x58] sm:$0xff]   ;;  %v1321_v20 = vld [vmem:[%s1773_s1 + $0x50] sm:$0xff]  }
   0x6   :  { %1161 = vmatprep.subr.bf16.mxu1 %v1306_v5  ;;  %v1314_v13 = vld [vmem:[%s1773_s1 + $0xe0] sm:$0xff]   ;;  %v1318_v17 = vld [vmem:[%s1773_s1 + $0xd8] sm:$0xff]   ;;  %v1322_v21 = vld [vmem:[%s1773_s1 + $0xd0] sm:$0xff]  }
   0x7   :  { %v1315_v14 = vld [vmem:[%s1773_s1 + $0x20] sm:$0xff]   ;;  %v1319_v18 = vld [vmem:[%s1773_s1 + $0x18] sm:$0xff]   ;;  %v1323_v22 = vld [vmem:[%s1773_s1 + $0x10] sm:$0xff]  }
   0x8   :  { %1140 = vmatpush3.bf16.msra.mxu0 %v1307_v6  ;;  %v1316_v15 = vld [vmem:[%s1773_s1 + $0xa0] sm:$0xff]   ;;  %v1320_v19 = vld [vmem:[%s1773_s1 + $0x98] sm:$0xff]   ;;  %v1324_v23 = vld [vmem:[%s1773_s1 + $0x90] sm:$0xff]  }
   0x9   :  { %1162 = vmatpush3.bf16.msra.mxu1 %v1308_v7  ;;  %1141 = vmatprep.subr.bf16.mxu0 %v1309_v8  ;;  %v1325_v24 = vld [vmem:[%s1773_s1 + $0x48] sm:$0xff]   ;;  %v1329_v28 = vld [vmem:[%s1773_s1 + $0x40] sm:$0xff]   ;;  %v46_v33 = vld [vmem:[%s1772_s0 + $0x18] sm:$0xff] }
   0xa   :  { %1163 = vmatprep.subr.bf16.mxu1 %v1310_v9  ;;  %v1326_v25 = vld [vmem:[%s1773_s1 + $0xc8] sm:$0xff]   ;;  %v1330_v29 = vld [vmem:[%s1773_s1 + $0xc0] sm:$0xff]   ;;  %v53_v36 = vpack.c.bf16 %v46_v33, %v46_v33  ;;  %v45_v38 = vld [vmem:[%s1772_s0 + $0x10] sm:$0xff] }
   0xb   :  { %v1327_v26 = vld [vmem:[%s1773_s1 + $0x8] sm:$0xff]   ;;  %v1331_v30 = vld [vmem:[%s1773_s1] sm:$0xff]   ;;  %v52_v39 = vpack.c.bf16 %v45_v38, %v45_v38  ;;  %v1333_v40 = vld [vmem:[%s1773_s1 + $0x178] sm:$0xff]  }
   0xc   :  { %1142 = vmatpush3.bf16.msra.mxu0 %v1311_v10  ;;  %v1328_v27 = vld [vmem:[%s1773_s1 + $0x88] sm:$0xff]   ;;  %v1332_v31 = vld [vmem:[%s1773_s1 + $0x80] sm:$0xff]   ;;  %525 = vmatprep.mubr.bf16.mxu1 %v53_v36  ;;  %v1334_v42 = vld [vmem:[%s1773_s1 + $0x138] sm:$0xff]  }
   0xd   :  { %1164 = vmatpush3.bf16.msra.mxu1 %v1312_v11  ;;  %1143 = vmatprep.subr.bf16.mxu0 %v1313_v12  ;;  %v44_v32 = vld [vmem:[%s1772_s0 + $0x8] sm:$0xff]  ;;  %v43_v34 = vld [vmem:[%s1772_s0] sm:$0xff]  ;;  %v1335_v43 = vld [vmem:[%s1773_s1 + $0x170] sm:$0xff]  }
   0xe   :  { %1165 = vmatprep.subr.bf16.mxu1 %v1314_v13  ;;  %v51_v35 = vpack.c.bf16 %v44_v32, %v44_v32  ;;  %v50_v37 = vpack.c.bf16 %v43_v34, %v43_v34  ;;  %v1336_v44 = vld [vmem:[%s1773_s1 + $0x130] sm:$0xff]   ;;  %v1337_v45 = vld [vmem:[%s1773_s1 + $0x168] sm:$0xff]   ;;  %v1339_v47 = vld [vmem:[%s1773_s1 + $0x160] sm:$0xff]  }
   0xf   :  { %v1338_v46 = vld [vmem:[%s1773_s1 + $0x128] sm:$0xff]   ;;  %v1340_v48 = vld [vmem:[%s1773_s1 + $0x120] sm:$0xff]   ;;  %v1341_v49 = vld [vmem:[%s1773_s1 + $0x158] sm:$0xff]  }
  0x10   :  { %1144 = vmatpush3.bf16.msra.mxu0 %v1315_v14  ;;  %485 = vmatprep.mubr.bf16.mxu0 %v51_v35  ;;  %v1342_v50 = vld [vmem:[%s1773_s1 + $0x118] sm:$0xff]   ;;  %v1343_v51 = vld [vmem:[%s1773_s1 + $0x150] sm:$0xff]   ;;  %v1349_v52 = vld [vmem:[%s1773_s1 + $0x180] sm:$0xff]  }
  0x11   :  { %1166 = vmatpush3.bf16.msra.mxu1 %v1316_v15  ;;  %1145 = vmatprep.subr.bf16.mxu0 %v1317_v16  ;;  %v48_v53 = vld [vmem:[%s1772_s0 + $0x28] sm:$0xff]  ;;  %v49_v55 = vld [vmem:[%s1772_s0 + $0x30] sm:$0xff]  ;;  %v1347_v60 = vld [vmem:[%s1773_s1 + $0x140] sm:$0xff]  }
  0x12   :  { %1167 = vmatprep.subr.bf16.mxu1 %v1318_v17  ;;  %v55_v54 = vpack.c.bf16 %v48_v53, %v48_v53  ;;  %v1344_v56 = vld [vmem:[%s1773_s1 + $0x110] sm:$0xff]   ;;  %v56_v57 = vpack.c.bf16 %v49_v55, %v49_v55  ;;  %v1345_v58 = vld [vmem:[%s1773_s1 + $0x148] sm:$0xff]   ;;  %v1348_v61 = vld [vmem:[%s1773_s1 + $0x100] sm:$0xff]  }
  0x13   :  { %v1346_v59 = vld [vmem:[%s1773_s1 + $0x108] sm:$0xff]   ;;  %v47_v62 = vld [vmem:[%s1772_s0 + $0x20] sm:$0xff] }
  0x14   :  { %1146 = vmatpush3.bf16.msra.mxu0 %v1319_v18  ;;  %v54_v63 = vpack.c.bf16 %v47_v62, %v47_v62 }
  0x15   :  { %1168 = vmatpush3.bf16.msra.mxu1 %v1320_v19  ;;  %1147 = vmatprep.subr.bf16.mxu0 %v1321_v20 }
  0x16   :  { %1169 = vmatprep.subr.bf16.mxu1 %v1322_v21 }
  0x18   :  { %1148 = vmatpush3.bf16.msra.mxu0 %v1323_v22 }
  0x19   :  { %1170 = vmatpush3.bf16.msra.mxu1 %v1324_v23  ;;  %1149 = vmatprep.subr.bf16.mxu0 %v1325_v24 }
  0x1a   :  { %1171 = vmatprep.subr.bf16.mxu1 %v1326_v25 }
  0x1c   :  { %1150 = vmatpush3.bf16.msra.mxu0 %v1327_v26 }
  0x1d   :  { %1172 = vmatpush3.bf16.msra.mxu1 %v1328_v27  ;;  %1151 = vmatprep.subr.bf16.mxu0 %v1329_v28 }
  0x1e   :  { %1173 = vmatprep.subr.bf16.mxu1 %v1330_v29 }
  0x20   :  { %1152 = vmatpush3.bf16.msra.mxu0 %v1331_v30 }
  0x21   :  { %1174 = vmatpush3.bf16.msra.mxu1 %v1332_v31  ;;  %1181 = vmatprep.subr.bf16.mxu0 %v1333_v40 }
  0x22   :  { %1232 = vmatprep.subr.bf16.mxu1 %v1402_v41 }
  0x23   :  { %486 = vmatmul.mubr.bf16.vlgmr.msra.gmra.mxu0 %v50_v37 }
  0x24   :  { %526 = vmatmul.mubr.bf16.vlgmr.msra.gmra.mxu1 %v52_v39  ;;  %1182 = vmatpush3.bf16.msra.mxu0 %v1334_v42 }
  0x25   :  { %1234 = vmatprep.mubr.msk.bf16.mxu1 %vm1403_vm0, %v1402_v41  ;;  %1183 = vmatprep.subr.bf16.mxu0 %v1335_v43 }
  0x26   :  { %1233 = vmatpush3.bf16.msra.mxu1 %v1349_v52  ;;  %565 = vmatprep.mubr.bf16.mxu0 %v55_v54 }
  0x27   :  { %1238 = vmatprep.subr.bf16.mxu1 %v1402_v41 }
  0x28   :  { %1184 = vmatpush3.bf16.msra.mxu0 %v1336_v44 }
  0x29   :  { %1185 = vmatprep.subr.bf16.mxu0 %v1337_v45 }
  0x2c   :  { %1186 = vmatpush3.bf16.msra.mxu0 %v1338_v46  ;;  %1235 = vmatmul.mubr.msk.bf16.vlgmr.msra.gmra.mxu1 %vm449_vm1, %v56_v57 }
  0x2d   :  { %1187 = vmatprep.subr.bf16.mxu0 %v1339_v47  ;;  %1254 = vmatprep.mubr.msk.bf16.mxu1 %vm1403_vm0, %v1402_v41 }
  0x30   :  { %1188 = vmatpush3.bf16.msra.mxu0 %v1340_v48 }
  0x31   :  { %1189 = vmatprep.subr.bf16.mxu0 %v1341_v49 }
  0x34   :  { %1190 = vmatpush3.bf16.msra.mxu0 %v1342_v50 }
  0x35   :  { %1191 = vmatprep.subr.bf16.mxu0 %v1343_v51 }
  0x38   :  { %1192 = vmatpush3.bf16.msra.mxu0 %v1344_v56 }
  0x39   :  { %1193 = vmatprep.subr.bf16.mxu0 %v1345_v58 }
  0x3c   :  { %1194 = vmatpush3.bf16.msra.mxu0 %v1346_v59 }
  0x3d   :  { %1195 = vmatprep.subr.bf16.mxu0 %v1347_v60 }
  0x40   :  { %1196 = vmatpush3.bf16.msra.mxu0 %v1348_v61 }
  0x41   :  { %1258 = vmatprep.subr.bf16.mxu0 %v1402_v41 }
  0x42   :  { %17 = vsyncpa [#allocation3], 0  ;;  %v1350_v0 = vld [vmem:[%s1776_s4 + $0x38] sm:$0xff]   ;;  %v1351_v1 = vld [vmem:[%s1776_s4 + $0x30] sm:$0xff]   ;;  %v635_v48 = vlaneseq  ;;  %s1404_s17 = smov [#allocation2]  }
  0x43   :  { %566 = vmatmul.mubr.bf16.vlgmr.msra.gmra.mxu0 %v54_v63  ;;  %1239 = vmatpush3.bf16.msra.mxu1 %v1350_v0  ;;  %v1352_v2 = vld [vmem:[%s1776_s4 + $0x28] sm:$0xff]   ;;  %v1353_v3 = vld [vmem:[%s1776_s4 + $0x20] sm:$0xff]   ;;  %v1354_v4 = vld [vmem:[%s1776_s4 + $0x18] sm:$0xff]  }
  0x44   :  { %1274 = vmatprep.mubr.msk.bf16.mxu0 %vm1403_vm0, %v1402_v41  ;;  %1240 = vmatprep.subr.bf16.mxu1 %v1402_v41  ;;  %v1355_v5 = vld [vmem:[%s1776_s4 + $0x10] sm:$0xff]   ;;  %v1356_v6 = vld [vmem:[%s1776_s4 + $0x8] sm:$0xff]   ;;  %v1357_v7 = vld [vmem:[%s1776_s4] sm:$0xff]   ;;  %v636_v49 = vshrl.u32 %v635_v48, 7 }
  0x45   :  { %v630_v50 = vld [vmem:[%s1774_s2] sm:$0x1]  ;;  %v1358_v60 = vld [vmem:[%s1779_s7 + $0x38] sm:$0xff]   ;;  %v1359_v61 = vld [vmem:[%s1779_s7 + $0x30] sm:$0xff]  }
  0x46   :  { %v1682_v51 = vsub.s32 0, %v636_v49  ;;  %v1109_v55 = vld [vmem:[%s1775_s3] ss:$0 sm:$0xff]  ;;  %1259 = vmatpush3.bf16.msra.mxu0 %v1358_v60  ;;  %v1360_v62 = vld [vmem:[%s1779_s7 + $0x28] sm:$0xff]   ;;  %v1362_v0 = vld [vmem:[%s1779_s7 + $0x18] sm:$0xff]  }
  0x47   :  { %1241 = vmatpush3.bf16.msra.mxu1 %v1351_v1  ;;  %1260 = vmatprep.subr.bf16.mxu0 %v1402_v41  ;;  %v1361_v63 = vld [vmem:[%s1779_s7 + $0x20] sm:$0xff]   ;;  %v1363_v1 = vld [vmem:[%s1779_s7 + $0x10] sm:$0xff]  }
  0x48   :  { %1242 = vmatprep.subr.bf16.mxu1 %v1402_v41 }
  0x4a   :  { %1261 = vmatpush3.bf16.msra.mxu0 %v1359_v61 }
  0x4b   :  { %1243 = vmatpush3.bf16.msra.mxu1 %v1352_v2  ;;  %1262 = vmatprep.subr.bf16.mxu0 %v1402_v41  ;;  %v1364_v2 = vld [vmem:[%s1779_s7 + $0x8] sm:$0xff]  }
  0x4c   :  { %1244 = vmatprep.subr.bf16.mxu1 %v1402_v41 }
  0x4e   :  { %1263 = vmatpush3.bf16.msra.mxu0 %v1360_v62 }
  0x4f   :  { %1245 = vmatpush3.bf16.msra.mxu1 %v1353_v3  ;;  %1264 = vmatprep.subr.bf16.mxu0 %v1402_v41  ;;  %v1365_v3 = vld [vmem:[%s1779_s7] sm:$0xff]   ;;  %s1051_s7 = sshll.u32 %s1404_s17, 4  ;;  %s1052_s7 = int_to_ptr.vmem [resolvable:$true] %s1051_s7 }
  0x50   :  { %1246 = vmatprep.subr.bf16.mxu1 %v1402_v41  ;;  %p1385_p1 = scmp.lt.s32.totalorder %s1052_s7, %s1052_s7 }
  0x52   :  { %1265 = vmatpush3.bf16.msra.mxu0 %v1361_v63 }
  0x53   :  { %1247 = vmatpush3.bf16.msra.mxu1 %v1354_v4  ;;  %1266 = vmatprep.subr.bf16.mxu0 %v1402_v41 }
  0x54   :  { %1248 = vmatprep.subr.bf16.mxu1 %v1402_v41 }
  0x56   :  { %1267 = vmatpush3.bf16.msra.mxu0 %v1362_v0  ;;  %v912_v0 = vld [vmem:[%s1780_s8] sm:$0x1]  ;;  %s1380_s8 = scalar_lea.vmem %s1052_s7, 128 }
  0x57   :  { %1249 = vmatpush3.bf16.msra.mxu1 %v1355_v5  ;;  %1268 = vmatprep.subr.bf16.mxu0 %v1402_v41  ;;  %p1381_p0 = scmp.ne.s32.totalorder %s1052_s7, %s1380_s8  ;;  %p1386_p2 = scmp.lt.s32.totalorder %s1380_s8, %s1380_s8 }
  0x58   :  { %1250 = vmatprep.subr.bf16.mxu1 %v1402_v41 }
  0x59   :  { %p1387_p3 = por %p1386_p2, %p1385_p1 }
  0x5a   :  { %1269 = vmatpush3.bf16.msra.mxu0 %v1363_v1 }
  0x5b   :  { %1251 = vmatpush3.bf16.msra.mxu1 %v1356_v6  ;;  %1270 = vmatprep.subr.bf16.mxu0 %v1402_v41  ;;  %p1388_p4 = pnand %p1387_p3, %p1381_p0 }
  0x5c   :  { %1252 = vmatprep.subr.bf16.mxu1 %v1402_v41 }
  0x5e   :  { %1271 = vmatpush3.bf16.msra.mxu0 %v1364_v2 }
  0x5f   :  { %1253 = vmatpush3.bf16.msra.mxu1 %v1357_v7  ;;  %1272 = vmatprep.subr.bf16.mxu0 %v1402_v41 }
  0x60   :  { %1278 = vmatprep.subr.bf16.mxu1 %v1402_v41 }
  0x62   :  { %1273 = vmatpush3.bf16.msra.mxu0 %v1365_v3 }
  0xe3   :  { %v1153_v8 = vpop.f32.mrf.mxu0 }
  0xe4   :  { %v1175_v9 = vpop.f32.mrf.mxu1 }
  0xe5   :  { %v1154_v10 = vpop.f32.mrf.mxu0 }
  0xe6   :  { %v1176_v11 = vpop.f32.mrf.mxu1  ;;  %v1155_v20 = vadd.f32 %v1154_v10, %v1153_v8 }
  0xe7   :  { %v1156_v12 = vpop.f32.mrf.mxu0  ;;  %v1177_v21 = vadd.f32 %v1176_v11, %v1175_v9 }
  0xe8   :  { %v1178_v13 = vpop.f32.mrf.mxu1 }
  0xe9   :  { %v1157_v14 = vpop.f32.mrf.mxu0  ;;  %v528_v24 = vadd.f32 %v1177_v21, %v1155_v20 }
  0xea   :  { %v1179_v15 = vpop.f32.mrf.mxu1 }
  0xec   :  { %v607_v16 = vpop.f32.mrf.mxu1 }
  0xee   :  { %v1236_v17 = vpop.f32.mrf.mxu1 }
  0xf0   :  { %v610_v18 = vpop.f32.mrf.mxu1 }
  0xf2   :  { %v1237_v19 = vpop.f32.mrf.mxu1 }
 0x103   :  { %v1197_v22 = vpop.f32.mrf.mxu0 }
 0x105   :  { %v1198_v23 = vpop.f32.mrf.mxu0 }
 0x106   :  { %v1199_v25 = vadd.f32 %v1198_v23, %v1197_v22 }
 0x107   :  { %v1200_v26 = vpop.f32.mrf.mxu0 }
 0x108   :  { %v568_v27 = vadd.f32 %v1199_v25, %v528_v24  ;;  %v771_v25 = vld [vmem:[%s1777_s5] sm:$0x1] }
 0x109   :  { %v1201_v28 = vpop.f32.mrf.mxu0 }
 0x10a   :  { %v608_v29 = vadd.f32 %v607_v16, %v568_v27 }
 0x10c   :  { %v613_v30 = vrot.slane %v608_v29, 4 }
 0x10e   :  { %v614_v31 = vadd.f32 %v613_v30, %v608_v29 }
 0x110   :  { %v615_v32 = vrot.slane %v614_v31, 2 }
 0x112   :  { %v616_v33 = vadd.f32 %v615_v32, %v614_v31 }
 0x114   :  { %v617_v34 = vrot.slane %v616_v33, 1 }
 0x116   :  { %v618_v35 = vadd.f32 %v617_v34, %v616_v33  ;;  %v1366_v34 = vld [vmem:[%s1782_s10 + $0x38] sm:$0xff]  }
 0x118   :  { %v620_v36 = vmul.f32 0.125, %v618_v35  ;;  %v1367_v35 = vld [vmem:[%s1782_s10 + $0x30] sm:$0xff]  }
 0x11a   :  { %v621_v37 = vsub.f32 %v608_v29, %v620_v36  ;;  %v1118_v29 = vld [vmem:[%s1778_s6] ss:$0 sm:$0xff]  ;;  %v1368_v36 = vld [vmem:[%s1782_s10 + $0x28] sm:$0xff]  }
 0x11c   :  { %v622_v38 = vmul.f32 %v621_v37, %v621_v37 }
 0x11e   :  { %v623_v39 = vrot.slane %v622_v38, 4 }
 0x120   :  { %v624_v40 = vadd.f32 %v623_v39, %v622_v38  ;;  %v1370_v38 = vld [vmem:[%s1782_s10 + $0x18] sm:$0xff]   ;;  %v1371_v39 = vld [vmem:[%s1782_s10 + $0x10] sm:$0xff]  }
 0x122   :  { %v625_v42 = vrot.slane %v624_v40, 2 }
 0x124   :  { %v626_v43 = vadd.f32 %v625_v42, %v624_v40  ;;  %v1372_v40 = vld [vmem:[%s1782_s10 + $0x8] sm:$0xff]   ;;  %v1373_v42 = vld [vmem:[%s1782_s10] sm:$0xff]  }
 0x126   :  { %v627_v44 = vrot.slane %v626_v43, 1 }
 0x128   :  { %v628_v45 = vadd.f32 %v627_v44, %v626_v43 }
 0x12a   :  { %v629_v46 = vmul.f32 0.125, %v628_v45 }
 0x12c   :  { %v631_v47 = vadd.f32 1e-05, %v629_v46 }
 0x12e   :  { %1374 = vrsqrt.f32 %v631_v47 }
 0x13b   :  { %v1375_v52 = vpop.eup %1374 }
 0x13c   :  { %v633_v53 = vmul.f32 %v1375_v52, %v630_v50 }
 0x13e   :  { %v638_v54 = vrot.slane %v633_v53, %v1682_v51 }
 0x140   :  { %v640_v56 = vmul.f32 %v638_v54, %v621_v37  ;;  %v1369_v37 = vld [vmem:[%s1782_s10 + $0x20] sm:$0xff]  }
 0x142   :  { %v648_v57 = vadd.f32 %v1109_v55, %v640_v56 }
 0x144   :  { %v649_v58 = vmax.f32 %v648_v57, 0.0 }
 0x146   :  { %v650_v59 = vpack.c.bf16 %v649_v58, %v649_v58 }
 0x148   :  { %1255 = vmatmul.mubr.bf16.vlgmr.msra.gmra.mxu1 %v650_v59 }
 0x149   :  { %1294 = vmatprep.mubr.msk.bf16.mxu1 %vm1403_vm0, %v1402_v41  ;;  %1279 = vmatpush3.bf16.msra.mxu1 %v1366_v34 }
 0x14a   :  { %1280 = vmatprep.subr.bf16.mxu1 %v1402_v41 }
 0x14d   :  { %1281 = vmatpush3.bf16.msra.mxu1 %v1367_v35 }
 0x14e   :  { %1282 = vmatprep.subr.bf16.mxu1 %v1402_v41 }
 0x151   :  { %1283 = vmatpush3.bf16.msra.mxu1 %v1368_v36 }
 0x152   :  { %1284 = vmatprep.subr.bf16.mxu1 %v1402_v41 }
 0x155   :  { %1285 = vmatpush3.bf16.msra.mxu1 %v1369_v37 }
 0x156   :  { %1286 = vmatprep.subr.bf16.mxu1 %v1402_v41 }
 0x159   :  { %1287 = vmatpush3.bf16.msra.mxu1 %v1370_v38 }
 0x15a   :  { %1288 = vmatprep.subr.bf16.mxu1 %v1402_v41 }
 0x15d   :  { %1289 = vmatpush3.bf16.msra.mxu1 %v1371_v39 }
 0x15e   :  { %1290 = vmatprep.subr.bf16.mxu1 %v1402_v41 }
 0x161   :  { %1291 = vmatpush3.bf16.msra.mxu1 %v1372_v40 }
 0x162   :  { %1292 = vmatprep.subr.bf16.mxu1 %v1402_v41 }
 0x165   :  { %1293 = vmatpush3.bf16.msra.mxu1 %v1373_v42 }
 0x208   :  { %v749_v4 = vpop.f32.mrf.mxu1 }
 0x209   :  { %v755_v5 = vrot.slane %v749_v4, 4 }
 0x20a   :  { %v1256_v6 = vpop.f32.mrf.mxu1 }
 0x20b   :  { %v756_v7 = vadd.f32 %v755_v5, %v749_v4 }
 0x20c   :  { %v752_v8 = vpop.f32.mrf.mxu1 }
 0x20d   :  { %v757_v9 = vrot.slane %v756_v7, 2 }
 0x20e   :  { %v1257_v10 = vpop.f32.mrf.mxu1 }
 0x20f   :  { %v758_v11 = vadd.f32 %v757_v9, %v756_v7  ;;  %v1128_v9 = vld [vmem:[%s1783_s11] ss:$0 sm:$0xff] }
 0x211   :  { %v759_v12 = vrot.slane %v758_v11, 1 }
 0x213   :  { %v760_v13 = vadd.f32 %v759_v12, %v758_v11 }
 0x215   :  { %v761_v14 = vmul.f32 0.125, %v760_v13 }
 0x217   :  { %v762_v15 = vsub.f32 %v749_v4, %v761_v14  ;;  %v1127_v4 = vld [vmem:[%s1781_s9] ss:$0 sm:$0xff] }
 0x219   :  { %v763_v16 = vmul.f32 %v762_v15, %v762_v15 }
 0x21b   :  { %v764_v17 = vrot.slane %v763_v16, 4 }
 0x21d   :  { %v765_v18 = vadd.f32 %v764_v17, %v763_v16 }
 0x21f   :  { %v766_v19 = vrot.slane %v765_v18, 2 }
 0x221   :  { %v767_v20 = vadd.f32 %v766_v19, %v765_v18 }
 0x223   :  { %v768_v21 = vrot.slane %v767_v20, 1 }
 0x225   :  { %v769_v22 = vadd.f32 %v768_v21, %v767_v20 }
 0x227   :  { %v770_v23 = vmul.f32 0.125, %v769_v22 }
 0x229   :  { %v772_v24 = vadd.f32 1e-05, %v770_v23 }
 0x22b   :  { %1376 = vrsqrt.f32 %v772_v24 }
 0x238   :  { %v1377_v26 = vpop.eup %1376 }
 0x239   :  { %v774_v27 = vmul.f32 %v1377_v26, %v771_v25 }
 0x23b   :  { %v779_v28 = vrot.slane %v774_v27, %v1682_v51 }
 0x23d   :  { %v781_v30 = vmul.f32 %v779_v28, %v762_v15 }
 0x23f   :  { %v789_v31 = vadd.f32 %v1118_v29, %v781_v30 }
 0x241   :  { %v790_v32 = vmax.f32 %v789_v31, 0.0 }
 0x243   :  { %v791_v33 = vpack.c.bf16 %v790_v32, %v790_v32 }
 0x245   :  { %1275 = vmatmul.mubr.bf16.vlgmr.msra.gmra.mxu0 %v791_v33 }
 0x305   :  { %v890_v43 = vpop.f32.mrf.mxu0 }
 0x306   :  { %v896_v44 = vrot.slane %v890_v43, 4 }
 0x307   :  { %v1276_v45 = vpop.f32.mrf.mxu0 }
 0x308   :  { %v897_v46 = vadd.f32 %v896_v44, %v890_v43 }
 0x309   :  { %v893_v47 = vpop.f32.mrf.mxu0 }
 0x30a   :  { %v898_v48 = vrot.slane %v897_v46, 2 }
 0x30b   :  { %v1277_v49 = vpop.f32.mrf.mxu0 }
 0x30c   :  { %v899_v50 = vadd.f32 %v898_v48, %v897_v46 }
 0x30e   :  { %v900_v52 = vrot.slane %v899_v50, 1 }
 0x310   :  { %v901_v53 = vadd.f32 %v900_v52, %v899_v50 }
 0x312   :  { %v902_v54 = vmul.f32 0.125, %v901_v53 }
 0x314   :  { %v903_v55 = vsub.f32 %v890_v43, %v902_v54 }
 0x316   :  { %v904_v56 = vmul.f32 %v903_v55, %v903_v55 }
 0x318   :  { %v905_v57 = vrot.slane %v904_v56, 4 }
 0x31a   :  { %v906_v41 = vadd.f32 %v905_v57, %v904_v56 }
 0x31c   :  { %v907_v58 = vrot.slane %v906_v41, 2 }
 0x31e   :  { %v908_v59 = vadd.f32 %v907_v58, %v906_v41 }
 0x320   :  { %v909_v60 = vrot.slane %v908_v59, 1 }
 0x322   :  { %v910_v61 = vadd.f32 %v909_v60, %v908_v59 }
 0x324   :  { %v911_v62 = vmul.f32 0.125, %v910_v61 }
 0x326   :  { %v913_v63 = vadd.f32 1e-05, %v911_v62 }
 0x328   :  { %1378 = vrsqrt.f32 %v913_v63 }
 0x335   :  { %v1379_v1 = vpop.eup %1378 }
 0x336   :  { %v915_v2 = vmul.f32 %v1379_v1, %v912_v0 }
 0x338   :  { %v920_v3 = vrot.slane %v915_v2, %v1682_v51 }
 0x33a   :  { %v922_v5 = vmul.f32 %v920_v3, %v903_v55 }
 0x33c   :  { %v930_v6 = vadd.f32 %v1127_v4, %v922_v5 }
 0x33e   :  { %v931_v7 = vmax.f32 %v930_v6, 0.0 }
 0x340   :  { %v932_v8 = vpack.c.bf16 %v931_v7, %v931_v7 }
 0x342   :  { %1295 = vmatmul.mubr.bf16.vlgmr.msra.gmra.mxu1 %v932_v8 }
 0x402   :  { %v1038_v10 = vpop.f32.mrf.mxu1 }
 0x403   :  { %v1039_v11 = vadd.f32 %v1128_v9, %v1038_v10 }
 0x404   :  { %v1296_v12 = vpop.f32.mrf.mxu1 }
 0x405   :  { %1044 = vst [vmem:[#allocation2] sm:$0xff] %v1039_v11 }
 0x406   :  { %v1041_v51 = vpop.f32.mrf.mxu1 }
 0x407   :  { %1391 = shalt.err (!%p1388_p4)
}
 0x408   :  { %1054 = dma.vmem_to_hbm [thread:$0]  %s1052_s7, 128, %s1784_s12, [#allocation3]   ;;  %v1297_v13 = vpop.f32.mrf.mxu1 }
 0x409   :  { %1400 = dma.done.wait [#allocation3], 128  }
 0x40a   :  { %1401 = vsyncadd [#allocation3], 4294967168 }
 0x40b   :  { %1058 = vsyncpa [#allocation3], 1 }

</bundles_post_ra>
